<compile_context>
chip_gen: v7x
topology: tpu7x:2x2x1
jax: 0.10.0
libtpu: 0.0.40
codegen_flags: <defaults>
</compile_context>

<pallas_src>
import math

import jax
import jax.numpy as jnp
from jax.experimental import pallas as pl
from jax.experimental.pallas import tpu as pltpu


def _diag_bilinear_kernel(x1_ref, x2_ref, r_ref, sn_ref, sp_ref, b_ref, o_ref):
    # Upcast each operand BEFORE the multiply (bf16-safe, f32 accumulation).
    prod = x1_ref[...].astype(jnp.float32) * x2_ref[...].astype(jnp.float32)
    # Weighted segmented reduce on the idle MXU: selectors are block-diagonal
    # with the Linear weights folded in, so the dot yields the per-original-row
    # scalars lane-major as a (tm, P) tile (no sublane->lane relayout).
    node = jnp.dot(prod, sn_ref[...],
                   precision=jax.lax.Precision.HIGHEST,
                   preferred_element_type=jnp.float32)
    pair = jnp.dot(r_ref[...].astype(jnp.float32), sp_ref[...],
                   precision=jax.lax.Precision.HIGHEST,
                   preferred_element_type=jnp.float32)
    o_ref[...] = (node + pair + b_ref[0]).astype(o_ref.dtype)


def _pack_factor(node_dim, pair_dim, m, max_pack=16):
    """Rows packed per lane-row so both packed widths are multiples of 128."""
    def per_dim(d):
        return 128 // math.gcd(d, 128)
    pn, pp = per_dim(node_dim), per_dim(pair_dim)
    p = pn * pp // math.gcd(pn, pp)          # lcm
    if p > max_pack or (m % p) != 0:
        return 1                             # unpacked fallback (no pad, no copy)
    return p


def _weighted_selector(weight, dim, p):
    """(p*dim, p) block-diagonal selector: sel[s*dim + k, s] = weight[k]."""
    w = jnp.asarray(weight, jnp.float32).reshape(dim)
    eye = jnp.eye(p, dtype=jnp.float32)
    return (eye[:, None, :] * w[None, :, None]).reshape(p * dim, p)


def diagonal_bilinear_with_pair_feature(x1, x2, r, w_diag, v_w, v_b, *,
                                        rows_per_tile=8192,
                                        vmem_input_budget_bytes=12 * 1024 * 1024):
    """x1, x2: (..., node_dim); r: (..., pair_dim).  Returns (..., 1) float32.

    w_diag: (1, node_dim) Linear weight, v_w: (1, pair_dim) Linear weight,
    v_b: (1,) bias (PyTorch nn.Linear parameter layout).
    """
    lead = x1.shape[:-1]
    node_dim = x1.shape[-1]
    pair_dim = r.shape[-1]
    M = 1
    for d in lead:
        M *= d
    if M == 0:
        return jnp.zeros((*lead, 1), jnp.float32)

    # Flatten leading dims; keep the input dtype (bf16 streams at half bytes).
    x1f = x1.reshape(M, node_dim)
    x2f = x2.reshape(M, node_dim)
    rf = r.reshape(M, pair_dim)

    # Lane packing: pure row-major reinterpretation -> a free reshape.
    p = _pack_factor(node_dim, pair_dim, M)
    Mp, Dn, Dp = M // p, p * node_dim, p * pair_dim
    x1p = x1f.reshape(Mp, Dn)
    x2p = x2f.reshape(Mp, Dn)
    rp = rf.reshape(Mp, Dp)

    sel_node = _weighted_selector(w_diag, node_dim, p)   # (Dn, p), resident
    sel_pair = _weighted_selector(v_w, pair_dim, p)      # (Dp, p), resident
    vb = jnp.asarray(v_b, jnp.float32).reshape(1)        # SMEM scalar

    # Row-tile sizing: large tiles amortize the ~0.35us per-grid-step overhead,
    # capped so double-buffered (lane-padded) input tiles fit v5e's scoped-VMEM
    # default.  No ">=8 steps" shrink (parallel sharding gains ~0 on 1-TC chips).
    def _lane_pad(d):
        return ((d + 127) // 128) * 128
    bytes_per_row = (2 * _lane_pad(Dn) * x1f.dtype.itemsize
                     + _lane_pad(Dp) * rf.dtype.itemsize)
    tm = min(rows_per_tile // p, vmem_input_budget_bytes // (2 * bytes_per_row))
    tm = max(8, (tm // 8) * 8)
    if tm >= Mp:
        tm = Mp                      # single block covering every row
    grid_len = pl.cdiv(Mp, tm)       # ragged last block; OOB rows are masked

    cost = pl.CostEstimate(
        flops=2 * M * (node_dim + pair_dim) * p,
        transcendentals=0,
        bytes_accessed=M * (2 * node_dim * x1f.dtype.itemsize
                            + pair_dim * rf.dtype.itemsize + 4),
    )

    out2d = pl.pallas_call(
        _diag_bilinear_kernel,
        out_shape=jax.ShapeDtypeStruct((Mp, p), jnp.float32),
        grid_spec=pltpu.PrefetchScalarGridSpec(
            num_scalar_prefetch=0,
            grid=(grid_len,),
            in_specs=[
                pl.BlockSpec((tm, Dn), lambda i: (i, 0)),   # x1 packed tile
                pl.BlockSpec((tm, Dn), lambda i: (i, 0)),   # x2 packed tile
                pl.BlockSpec((tm, Dp), lambda i: (i, 0)),   # r  packed tile
                pl.BlockSpec((Dn, p), lambda i: (0, 0)),    # node selector (resident)
                pl.BlockSpec((Dp, p), lambda i: (0, 0)),    # pair selector (resident)
                pl.BlockSpec(memory_space=pltpu.MemorySpace.SMEM),  # bias scalar
            ],
            out_specs=pl.BlockSpec((tm, p), lambda i: (i, 0)),
        ),
        compiler_params=pltpu.CompilerParams(
            dimension_semantics=("parallel",)),
        cost_estimate=cost,
    )(x1p, x2p, rp, sel_node, sel_pair, vb)

    # (Mp, p) row-major == original row order -> reshape back, no relayout.
    return out2d.reshape(*lead, 1)


if __name__ == "__main__":
    # Small shapes consistent with the module.
    B, S = 2, 64
    node_dim, pair_dim = 32, 16

    key = jax.random.PRNGKey(0)
    k1, k2, k3, k4, k5, k6 = jax.random.split(key, 6)

    x1 = jax.random.normal(k1, (B, S, node_dim), dtype=jnp.float32)
    x2 = jax.random.normal(k2, (B, S, node_dim), dtype=jnp.float32)
    r = jax.random.normal(k3, (B, S, pair_dim), dtype=jnp.float32)

    # PyTorch parameter layout: W_diag.weight (1, node_dim),
    # V.weight (1, pair_dim), V.bias (1,).
    w_diag = jax.random.normal(k4, (1, node_dim), dtype=jnp.float32) * 0.1
    v_w = jax.random.normal(k5, (1, pair_dim), dtype=jnp.float32) * 0.1
    v_b = jax.random.normal(k6, (1,), dtype=jnp.float32) * 0.1

    out = diagonal_bilinear_with_pair_feature(x1, x2, r, w_diag, v_w, v_b)
    out = jax.block_until_ready(out)

    # Exact elementwise f32 reference (same math as the PyTorch forward,
    # avoiding XLA's default reduced matmul precision in the reference itself).
    ref = (jnp.sum((x1 * x2) * w_diag.reshape(node_dim), axis=-1, keepdims=True)
           + jnp.sum(r * v_w.reshape(pair_dim), axis=-1, keepdims=True)
           + v_b[0])

    assert out.shape == (B, S, 1), out.shape
    assert jnp.allclose(out, ref, atol=1e-4, rtol=1e-4), (
        float(jnp.max(jnp.abs(out - ref))))

    print("KERNEL_OK")
</pallas_src>

<mosaic_0001>
module attributes {stable_mosaic.version = 11 : i64} {
  func.func @_diag_bilinear_kernel(%arg0: i32, %arg1: memref<16x256xf32, #tpu.memory_space<vmem>>, %arg2: memref<16x256xf32, #tpu.memory_space<vmem>>, %arg3: memref<16x128xf32, #tpu.memory_space<vmem>>, %arg4: memref<256x8xf32, #tpu.memory_space<vmem>>, %arg5: memref<128x8xf32, #tpu.memory_space<vmem>>, %arg6: memref<1xf32, #tpu.memory_space<smem>>, %arg7: memref<16x8xf32, #tpu.memory_space<vmem>>) attributes {dimension_semantics = [#tpu.dimension_semantics<parallel>], iteration_bounds = array<i64: 1>, scalar_prefetch = 0 : i64, scratch_operands = 0 : i64, tpu.core_type = #tpu.core_type<tc>, window_params = [{transform_indices = @transform_0, window_bounds = array<i64: 16, 256>}, {transform_indices = @transform_1, window_bounds = array<i64: 16, 256>}, {transform_indices = @transform_2, window_bounds = array<i64: 16, 128>}, {pipeline_mode = #tpu.pipeline_mode<synchronous>, transform_indices = @transform_3, window_bounds = array<i64: 256, 8>}, {pipeline_mode = #tpu.pipeline_mode<synchronous>, transform_indices = @transform_4, window_bounds = array<i64: 128, 8>}, {transform_indices = @transform_5, window_bounds = array<i64: 1>}, {transform_indices = @transform_6, window_bounds = array<i64: 16, 8>}]} {
    %c0 = arith.constant 0 : index
    %c0_0 = arith.constant 0 : index
    %0 = vector.load %arg1[%c0, %c0_0] : memref<16x256xf32, #tpu.memory_space<vmem>>, vector<16x256xf32>
    %c0_1 = arith.constant 0 : index
    %c0_2 = arith.constant 0 : index
    %1 = vector.load %arg2[%c0_1, %c0_2] : memref<16x256xf32, #tpu.memory_space<vmem>>, vector<16x256xf32>
    %2 = arith.mulf %0, %1 : vector<16x256xf32>
    %c0_3 = arith.constant 0 : index
    %c0_4 = arith.constant 0 : index
    %3 = vector.load %arg4[%c0_3, %c0_4] : memref<256x8xf32, #tpu.memory_space<vmem>>, vector<256x8xf32>
    %cst = arith.constant dense<0.000000e+00> : vector<16x8xf32>
    %4 = tpu.matmul %2, %3, %cst {dimension_numbers = #tpu.dot_dimension_numbers<[1], [0], [0], [1], [0, 0, 1, 1], [], []>, precision = #tpu.contract_precision<fp32>} : vector<16x256xf32>, vector<256x8xf32>, vector<16x8xf32> -> vector<16x8xf32>
    %c0_5 = arith.constant 0 : index
    %c0_6 = arith.constant 0 : index
    %5 = vector.load %arg3[%c0_5, %c0_6] : memref<16x128xf32, #tpu.memory_space<vmem>>, vector<16x128xf32>
    %c0_7 = arith.constant 0 : index
    %c0_8 = arith.constant 0 : index
    %6 = vector.load %arg5[%c0_7, %c0_8] : memref<128x8xf32, #tpu.memory_space<vmem>>, vector<128x8xf32>
    %cst_9 = arith.constant dense<0.000000e+00> : vector<16x8xf32>
    %7 = tpu.matmul %5, %6, %cst_9 {dimension_numbers = #tpu.dot_dimension_numbers<[1], [0], [0], [1], [0, 0, 1, 1], [], []>, precision = #tpu.contract_precision<fp32>} : vector<16x128xf32>, vector<128x8xf32>, vector<16x8xf32> -> vector<16x8xf32>
    %8 = arith.addf %4, %7 : vector<16x8xf32>
    %c0_10 = arith.constant 0 : index
    %9 = memref.load %arg6[%c0_10] : memref<1xf32, #tpu.memory_space<smem>>
    %10 = vector.broadcast %9 : f32 to vector<16x8xf32>
    %11 = arith.addf %8, %10 : vector<16x8xf32>
    %c0_11 = arith.constant 0 : index
    %c0_12 = arith.constant 0 : index
    %12 = vector.load %arg7[%c0_11, %c0_12] : memref<16x8xf32, #tpu.memory_space<vmem>>, vector<16x8xf32>
    tpu.vector_store %arg7[%c0_11, %c0_12], %11 {strides = array<i32>} : memref<16x8xf32, #tpu.memory_space<vmem>>, vector<16x8xf32>,
    return
  }
  func.func @transform_0(%arg0: i32) -> (i32, i32) {
    %c0_i32 = arith.constant 0 : i32
    %c0_i32_0 = arith.constant 0 : i32
    return %arg0, %c0_i32 : i32, i32
  }
  func.func @transform_1(%arg0: i32) -> (i32, i32) {
    %c0_i32 = arith.constant 0 : i32
    %c0_i32_0 = arith.constant 0 : i32
    return %arg0, %c0_i32 : i32, i32
  }
  func.func @transform_2(%arg0: i32) -> (i32, i32) {
    %c0_i32 = arith.constant 0 : i32
    %c0_i32_0 = arith.constant 0 : i32
    return %arg0, %c0_i32 : i32, i32
  }
  func.func @transform_3(%arg0: i32) -> (i32, i32) {
    %c0_i32 = arith.constant 0 : i32
    %c0_i32_0 = arith.constant 0 : i32
    %c0_i32_1 = arith.constant 0 : i32
    return %c0_i32, %c0_i32_0 : i32, i32
  }
  func.func @transform_4(%arg0: i32) -> (i32, i32) {
    %c0_i32 = arith.constant 0 : i32
    %c0_i32_0 = arith.constant 0 : i32
    %c0_i32_1 = arith.constant 0 : i32
    return %c0_i32, %c0_i32_0 : i32, i32
  }
  func.func @transform_5(%arg0: i32) -> i32 {
    %c0_i32 = arith.constant 0 : i32
    %c0_i32_0 = arith.constant 0 : i32
    return %c0_i32 : i32
  }
  func.func @transform_6(%arg0: i32) -> (i32, i32) {
    %c0_i32 = arith.constant 0 : i32
    %c0_i32_0 = arith.constant 0 : i32
    return %arg0, %c0_i32 : i32, i32
  }
}

</mosaic_0001>

<bundles_post_ra>
// kernel: tpu_custom_call.1
= control target key start
LH: loop header
LB: loop body
LE: loop exit
PB: predicated region body
PF: predicated region fallthrough
CT: control target
= control target key end

     0   :  { %vm1692_vm0 = vcmask 64512   ;;  %s3731_s4 = inlined_call_operand.vmem [shape: f32[128,8], index: 4, kind: input, shape index: {}]   ;;  %s3732_s3 = inlined_call_operand.vmem [shape: f32[256,8], index: 3, kind: input, shape index: {}]   ;;  %s3733_s2 = inlined_call_operand.vmem [shape: f32[16,128], index: 2, kind: input, shape index: {}]   ;;  %s3734_s0 = inlined_call_operand.vmem [shape: f32[16,256], index: 0, kind: input, shape index: {}]   ;;  %s3735_s1 = inlined_call_operand.vmem [shape: f32[16,256], index: 1, kind: input, shape index: {}]   ;;  %s3736_s5 = inlined_call_operand.<no memory space> [shape: f32[1], index: 5, kind: input, shape index: {}]   ;;  %s3737_s6 = inlined_call_operand.vmem [shape: f32[16,8], index: 6, kind: output, shape index: {}]  }
   0x1   :  { %v2677_v0 = vld [vmem:[%s3731_s4] sm:$0xff]  ;;  %v2682_v1 = vld [vmem:[%s3731_s4 + $0x8] sm:$0xff]  ;;  %v2695_v7 = vld [vmem:[%s3731_s4 + $0x10] sm:$0xff] }
   0x2   :  { %v52_v2 = vld [vmem:[%s3732_s3 + $0x80] sm:$0xff]  ;;  %v3747_v3 = vand.u32 4294901760, %v2677_v0  ;;  %v3746_v4 = vand.u32 4294901760, %v2682_v1  ;;  %v53_v5 = vld [vmem:[%s3732_s3 + $0x88] sm:$0xff]  ;;  %v2700_v8 = vld [vmem:[%s3731_s4 + $0x18] sm:$0xff]  ;;  %v3745_v10 = vand.u32 4294901760, %v2695_v7 }
   0x3   :  { %v819_v6 = vand.u32 4294901760, %v52_v2  ;;  %v822_v9 = vand.u32 4294901760, %v53_v5  ;;  %v3744_v11 = vand.u32 4294901760, %v2700_v8  ;;  %v36_v12 = vld [vmem:[%s3732_s3] sm:$0xff]  ;;  %v37_v13 = vld [vmem:[%s3732_s3 + $0x8] sm:$0xff]  ;;  %v54_v14 = vld [vmem:[%s3732_s3 + $0x90] sm:$0xff] }
   0x4   :  { %v2717_v15 = vpack.c.bf16 %v3746_v4, %v3747_v3  ;;  %v771_v17 = vand.u32 4294901760, %v36_v12  ;;  %v774_v18 = vand.u32 4294901760, %v37_v13  ;;  %v55_v19 = vld [vmem:[%s3732_s3 + $0x98] sm:$0xff]  ;;  %v2727_v20 = vld [vmem:[%s3731_s4 + $0x20] sm:$0xff]  ;;  %v2732_v21 = vld [vmem:[%s3731_s4 + $0x28] sm:$0xff]  ;;  %v825_v25 = vand.u32 4294901760, %v54_v14 }
   0x5   :  { %v2719_v16 = vsub.f32 %v52_v2, %v819_v6  ;;  %v2734_v22 = vpack.c.bf16 %v822_v9, %v819_v6  ;;  %v2736_v23 = vsub.f32 %v53_v5, %v822_v9  ;;  %v2742_v24 = vpack.c.bf16 %v3744_v11, %v3745_v10  ;;  %v38_v26 = vld [vmem:[%s3732_s3 + $0x10] sm:$0xff]  ;;  %v39_v27 = vld [vmem:[%s3732_s3 + $0x18] sm:$0xff]  ;;  %v56_v28 = vld [vmem:[%s3732_s3 + $0xa0] sm:$0xff] }
   0x6   :  { %3888 = vst [vmem:[#allocation3_spill] sm:$0xff] %v2717_v15  ;;  %2246 = vmatprep.subr.bf16.mxu0 %v2717_v15  ;;  %v2754_v29 = vpack.c.bf16 %v774_v18, %v771_v17  ;;  %v2756_v30 = vsub.f32 %v36_v12, %v771_v17  ;;  %v2758_v31 = vsub.f32 %v37_v13, %v774_v18  ;;  %v828_v32 = vand.u32 4294901760, %v55_v19  ;;  %v57_v33 = vld [vmem:[%s3732_s3 + $0xa8] sm:$0xff]  ;;  %v2766_v34 = vld [vmem:[%s3731_s4 + $0x30] sm:$0xff]  ;;  %v2777_v39 = vld [vmem:[%s3731_s4 + $0x38] sm:$0xff] }
   0x7   :  { %3889 = vst [vmem:[#allocation4_spill] sm:$0xff] %v2734_v22  ;;  %3890 = vst [vmem:[#allocation5_spill] sm:$0xff] %v2742_v24  ;;  %2248 = vmatpush3.bf16.msra.mxu0 %v2717_v15  ;;  %2438 = vmatprep.subr.bf16.mxu1 %v2734_v22  ;;  %v2770_v35 = vsub.f32 %v54_v14, %v825_v25  ;;  %v3743_v36 = vand.u32 4294901760, %v2727_v20  ;;  %v3742_v37 = vand.u32 4294901760, %v2732_v21  ;;  %v777_v38 = vand.u32 4294901760, %v38_v26  ;;  %v40_v44 = vld [vmem:[%s3732_s3 + $0x20] sm:$0xff] }
   0x8   :  { %3891 = vst [vmem:[#allocation6_spill] sm:$0xff] %v2754_v29  ;;  %2250 = vmatprep.subr.bf16.mxu0 %v2742_v24  ;;  %2440 = vmatpush3.bf16.msra.mxu1 %v2754_v29  ;;  %v2781_v40 = vpack.c.bf16 %v828_v32, %v825_v25  ;;  %v2783_v41 = vsub.f32 %v55_v19, %v828_v32  ;;  %v780_v42 = vand.u32 4294901760, %v39_v27  ;;  %v831_v43 = vand.u32 4294901760, %v56_v28  ;;  %v41_v45 = vld [vmem:[%s3732_s3 + $0x28] sm:$0xff]  ;;  %v58_v50 = vld [vmem:[%s3732_s3 + $0xb0] sm:$0xff]  ;;  %v59_v51 = vld [vmem:[%s3732_s3 + $0xb8] sm:$0xff] }
   0x9   :  { %v2795_v46 = vpack.c.bf16 %v3742_v37, %v3743_v36  ;;  %v2797_v47 = vsub.f32 %v38_v26, %v777_v38  ;;  %v834_v48 = vand.u32 4294901760, %v57_v33  ;;  %v3741_v49 = vand.u32 4294901760, %v2766_v34  ;;  %v2809_v52 = vld [vmem:[%s3731_s4 + $0x40] sm:$0xff]  ;;  %v2822_v57 = vld [vmem:[%s3731_s4 + $0x48] sm:$0xff]  ;;  %v42_v62 = vld [vmem:[%s3732_s3 + $0x30] sm:$0xff] }
   0xa   :  { %3892 = vst [vmem:[#allocation7_spill] sm:$0xff] %v2781_v40  ;;  %2442 = vmatprep.subr.bf16.mxu1 %v2781_v40  ;;  %v2812_v53 = vpack.c.bf16 %v780_v42, %v777_v38  ;;  %v2814_v54 = vsub.f32 %v39_v27, %v780_v42  ;;  %v2816_v55 = vsub.f32 %v56_v28, %v831_v43  ;;  %v3740_v56 = vand.u32 4294901760, %v2777_v39  ;;  %v43_v9 = vld [vmem:[%s3732_s3 + $0x38] sm:$0xff]  ;;  %v60_v12 = vld [vmem:[%s3732_s3 + $0xc0] sm:$0xff]  ;;  %v61_v13 = vld [vmem:[%s3732_s3 + $0xc8] sm:$0xff] }
   0xb   :  { %3893 = vst [vmem:[#allocation8_spill] sm:$0xff] %v2795_v46  ;;  %2252 = vmatpush3.bf16.msra.mxu0 %v2742_v24  ;;  %v2825_v58 = vpack.c.bf16 %v834_v48, %v831_v43  ;;  %v2827_v59 = vsub.f32 %v57_v33, %v834_v48  ;;  %v783_v60 = vand.u32 4294901760, %v40_v44  ;;  %v786_v61 = vand.u32 4294901760, %v41_v45  ;;  %v2861_v25 = vld [vmem:[%s3731_s4 + $0x50] sm:$0xff]  ;;  %v2866_v26 = vld [vmem:[%s3731_s4 + $0x58] sm:$0xff]  ;;  %v44_v27 = vld [vmem:[%s3732_s3 + $0x40] sm:$0xff] }
   0xc   :  { %3894 = vst [vmem:[#allocation9_spill] sm:$0xff] %v2812_v53  ;;  %2254 = vmatprep.subr.bf16.mxu0 %v2795_v46  ;;  %2444 = vmatpush3.bf16.msra.mxu1 %v2812_v53  ;;  %v2838_v63 = vpack.c.bf16 %v3740_v56, %v3741_v49  ;;  %v837_v2 = vand.u32 4294901760, %v58_v50  ;;  %v840_v5 = vand.u32 4294901760, %v59_v51  ;;  %v3739_v6 = vand.u32 4294901760, %v2809_v52  ;;  %v45_v48 = vld [vmem:[%s3732_s3 + $0x48] sm:$0xff]  ;;  %v46_v36 = vld [vmem:[%s3732_s3 + $0x50] sm:$0xff] }
   0xd   :  { %3895 = vst [vmem:[#allocation10_spill] sm:$0xff] %v2825_v58  ;;  %2446 = vmatprep.subr.bf16.mxu1 %v2825_v58  ;;  %v2851_v14 = vpack.c.bf16 %v786_v61, %v783_v60  ;;  %v2853_v17 = vsub.f32 %v40_v44, %v783_v60  ;;  %v2855_v18 = vsub.f32 %v41_v45, %v786_v61  ;;  %v3738_v19 = vand.u32 4294901760, %v2822_v57  ;;  %v47_v11 = vld [vmem:[%s3732_s3 + $0x58] sm:$0xff]  ;;  %v2952_v3 = vld [vmem:[%s3731_s4 + $0x70] sm:$0xff] }
   0xe   :  { %3896 = vst [vmem:[#allocation11_spill] sm:$0xff] %v2838_v63  ;;  %v2871_v28 = vpack.c.bf16 %v840_v5, %v837_v2  ;;  %v2873_v32 = vsub.f32 %v58_v50, %v837_v2  ;;  %v2875_v33 = vsub.f32 %v59_v51, %v840_v5  ;;  %v789_v38 = vand.u32 4294901760, %v42_v62  ;;  %v62_v50 = vld [vmem:[%s3732_s3 + $0xd0] sm:$0xff]  ;;  %v63_v5 = vld [vmem:[%s3732_s3 + $0xd8] sm:$0xff]  ;;  %3904 = vst [vmem:[#allocation19_spill] sm:$0xff] %v2952_v3 }
   0xf   :  { %3897 = vst [vmem:[#allocation12_spill] sm:$0xff] %v2851_v14  ;;  %2256 = vmatpush3.bf16.msra.mxu0 %v2795_v46  ;;  %v2882_v42 = vpack.c.bf16 %v3738_v19, %v3739_v6  ;;  %v792_v43 = vand.u32 4294901760, %v43_v9  ;;  %v843_v44 = vand.u32 4294901760, %v60_v12  ;;  %v846_v45 = vand.u32 4294901760, %v61_v13  ;;  %v2902_v19 = vld [vmem:[%s3731_s4 + $0x60] sm:$0xff]  ;;  %v2907_v6 = vld [vmem:[%s3731_s4 + $0x68] sm:$0xff] }
  0x10   :  { %3898 = vst [vmem:[#allocation13_spill] sm:$0xff] %v2871_v28  ;;  %2258 = vmatprep.subr.bf16.mxu0 %v2838_v63  ;;  %2448 = vmatpush3.bf16.msra.mxu1 %v2851_v14  ;;  %v2892_v51 = vsub.f32 %v42_v62, %v789_v38  ;;  %v3749_v60 = vand.u32 4294901760, %v2861_v25  ;;  %v3748_v61 = vand.u32 4294901760, %v2866_v26  ;;  %v795_v2 = vand.u32 4294901760, %v44_v27  ;;  %v50_v29 = vld [vmem:[%s3732_s3 + $0x70] sm:$0xff] }
  0x11   :  { %3899 = vst [vmem:[#allocation14_spill] sm:$0xff] %v2882_v42  ;;  %2450 = vmatprep.subr.bf16.mxu1 %v2871_v28  ;;  %v2910_v62 = vpack.c.bf16 %v792_v43, %v789_v38  ;;  %v2912_v56 = vsub.f32 %v43_v9, %v792_v43  ;;  %v2914_v49 = vpack.c.bf16 %v846_v45, %v843_v44  ;;  %v798_v38 = vand.u32 4294901760, %v45_v48  ;;  %v2957_v28 = vld [vmem:[%s3731_s4 + $0x78] sm:$0xff] }
  0x12   :  { %v2916_v37 = vsub.f32 %v60_v12, %v843_v44  ;;  %v2924_v10 = vsub.f32 %v61_v13, %v846_v45  ;;  %v2930_v9 = vpack.c.bf16 %v3748_v61, %v3749_v60  ;;  %v2932_v43 = vsub.f32 %v44_v27, %v795_v2  ;;  %v64_v13 = vld [vmem:[%s3732_s3 + $0xe0] sm:$0xff]  ;;  %v65_v45 = vld [vmem:[%s3732_s3 + $0xe8] sm:$0xff]  ;;  %3905 = vst [vmem:[#allocation20_spill] sm:$0xff] %v2957_v28 }
  0x13   :  { %3900 = vst [vmem:[#allocation15_spill] sm:$0xff] %v2910_v62  ;;  %3901 = vst [vmem:[#allocation16_spill] sm:$0xff] %v2914_v49  ;;  %2260 = vmatpush3.bf16.msra.mxu0 %v2838_v63  ;;  %v849_v12 = vand.u32 4294901760, %v62_v50  ;;  %v852_v44 = vand.u32 4294901760, %v63_v5  ;;  %v2945_v27 = vpack.c.bf16 %v798_v38, %v795_v2  ;;  %v2947_v61 = vsub.f32 %v45_v48, %v798_v38  ;;  %v49_v63 = vld [vmem:[%s3732_s3 + $0x68] sm:$0xff] }
  0x14   :  { %3902 = vst [vmem:[#allocation17_spill] sm:$0xff] %v2930_v9  ;;  %2262 = vmatprep.subr.bf16.mxu0 %v2882_v42  ;;  %2452 = vmatpush3.bf16.msra.mxu1 %v2910_v62  ;;  %v801_v60 = vand.u32 4294901760, %v46_v36  ;;  %v804_v4 = vand.u32 4294901760, %v47_v11  ;;  %v48_v62 = vld [vmem:[%s3732_s3 + $0x60] sm:$0xff]  ;;  %v3907_v14 = vand.u32 4294901760, %v2902_v19  ;;  %v3908_v58 = vand.u32 4294901760, %v2907_v6 }
  0x15   :  { %3903 = vst [vmem:[#allocation18_spill] sm:$0xff] %v2945_v27  ;;  %2454 = vmatprep.subr.bf16.mxu1 %v2914_v49  ;;  %v2963_v48 = vpack.c.bf16 %v852_v44, %v849_v12  ;;  %v2965_v2 = vsub.f32 %v62_v50, %v849_v12  ;;  %v2967_v38 = vsub.f32 %v63_v5, %v852_v44  ;;  %v66_v49 = vld [vmem:[%s3732_s3 + $0xf0] sm:$0xff]  ;;  %v67_v50 = vld [vmem:[%s3732_s3 + $0xf8] sm:$0xff]  ;;  %v807_v46 = vand.u32 4294901760, %v48_v62 }
  0x16   :  { %v2973_v53 = vpack.c.bf16 %v3908_v58, %v3907_v14  ;;  %v2984_v5 = vpack.c.bf16 %v804_v4, %v801_v60  ;;  %v2986_v12 = vsub.f32 %v46_v36, %v801_v60  ;;  %v2988_v44 = vsub.f32 %v47_v11, %v804_v4  ;;  %v68_v4 = vld [vmem:[%s3733_s2] sm:$0xff]  ;;  %v69_v11 = vld [vmem:[%s3733_s2 + $0x8] sm:$0xff] }
  0x17   :  { %3906 = vst [vmem:[#allocation21_spill] sm:$0xff] %v2963_v48  ;;  %v855_v58 = vand.u32 4294901760, %v64_v13  ;;  %2264 = vmatpush3.bf16.msra.mxu0 %v2882_v42  ;;  %v858_v14 = vand.u32 4294901760, %v65_v45  ;;  %v810_v24 = vand.u32 4294901760, %v49_v63  ;;  %v861_v36 = vand.u32 4294901760, %v66_v49 }
  0x18   :  { %3909 = vst [vmem:[#allocation22_spill] sm:$0xff] %v2973_v53  ;;  %3910 = vst [vmem:[#allocation23_spill] sm:$0xff] %v2984_v5  ;;  %2266 = vmatprep.subr.bf16.mxu0 %v2930_v9  ;;  %2456 = vmatpush3.bf16.msra.mxu1 %v2945_v27  ;;  %v864_v60 = vand.u32 4294901760, %v67_v50  ;;  %v3916_v27 = vand.u32 4294901760, %v2952_v3  ;;  %v3917_v42 = vand.u32 4294901760, %v2957_v28  ;;  %v3041_v28 = vand.u32 4294901760, %v69_v11 }
  0x19   :  { %3911 = vst [vmem:[#allocation24_spill] sm:$0xff] %v2986_v12  ;;  %3912 = vst [vmem:[#allocation25_spill] sm:$0xff] %v2988_v44  ;;  %v2995_v22 = vsub.f32 %v64_v13, %v855_v58  ;;  %2458 = vmatprep.subr.bf16.mxu1 %v2963_v48  ;;  %v3007_v40 = vpack.c.bf16 %v858_v14, %v855_v58  ;;  %v3009_v13 = vsub.f32 %v65_v45, %v858_v14  ;;  %v51_v44 = vld [vmem:[%s3732_s3 + $0x78] sm:$0xff]  ;;  %v25_v48 = vld [vmem:[%s3734_s0 + $0x8] sm:$0xff] }
  0x1a   :  { %v3015_v15 = vpack.c.bf16 %v3917_v42, %v3916_v27  ;;  %v29_v45 = vld [vmem:[%s3735_s1 + $0x8] sm:$0xff]  ;;  %v3028_v58 = vpack.c.bf16 %v810_v24, %v807_v46  ;;  %v3030_v14 = vsub.f32 %v49_v63, %v810_v24  ;;  %v3032_v42 = vpack.c.bf16 %v864_v60, %v861_v36  ;;  %3924 = vst [vmem:[#allocation35_spill] sm:$0xff] %v3041_v28 }
  0x1b   :  { %3913 = vst [vmem:[#allocation26_spill] sm:$0xff] %v2995_v22  ;;  %3914 = vst [vmem:[#allocation27_spill] sm:$0xff] %v3007_v40  ;;  %v3017_v22 = vsub.f32 %v48_v62, %v807_v46  ;;  %v3034_v62 = vsub.f32 %v66_v49, %v861_v36  ;;  %2268 = vmatpush3.bf16.msra.mxu0 %v2930_v9  ;;  %v3037_v27 = vsub.f32 %v67_v50, %v864_v60 }
  0x1c   :  { %3915 = vst [vmem:[#allocation28_spill] sm:$0xff] %v3009_v13  ;;  %3918 = vst [vmem:[#allocation29_spill] sm:$0xff] %v3015_v15  ;;  %v3925_v3 = vand.u32 4294901760, %v2677_v0  ;;  %2270 = vmatprep.subr.bf16.mxu0 %v2973_v53  ;;  %2460 = vmatpush3.bf16.msra.mxu1 %v2984_v5  ;;  %v3926_v24 = vand.u32 4294901760, %v2682_v1  ;;  %v813_v49 = vand.u32 4294901760, %v50_v29  ;;  %v816_v63 = vand.u32 4294901760, %v51_v44 }
  0x1d   :  { %3919 = vst [vmem:[#allocation30_spill] sm:$0xff] %v3017_v22  ;;  %3920 = vst [vmem:[#allocation31_spill] sm:$0xff] %v3028_v58  ;;  %v3039_v22 = vand.u32 4294901760, %v68_v4  ;;  %v33_v50 = vmul.f32 %v29_v45, %v25_v48  ;;  %2462 = vmatprep.subr.bf16.mxu1 %v3007_v40  ;;  %v3800_v60 = vand.u32 4294901760, %v2719_v16 }
  0x1e   :  { %3921 = vst [vmem:[#allocation32_spill] sm:$0xff] %v3030_v14  ;;  %3922 = vst [vmem:[#allocation33_spill] sm:$0xff] %v3032_v42  ;;  %v3046_v13 = vsub.f32 %v2677_v0, %v3925_v3  ;;  %v3053_v46 = vsub.f32 %v2682_v1, %v3926_v24  ;;  %v3061_v3 = vsub.f32 %v69_v11, %v3041_v28 }
  0x1f   :  { %3923 = vst [vmem:[#allocation34_spill] sm:$0xff] %v3039_v22  ;;  %v3057_v36 = vsub.f32 %v68_v4, %v3039_v22  ;;  %v3065_v9 = vpack.c.bf16 %v816_v63, %v813_v49  ;;  %v3067_v1 = vsub.f32 %v50_v29, %v813_v49  ;;  %v3069_v24 = vsub.f32 %v51_v44, %v816_v63  ;;  %v24_v49 = vld [vmem:[%s3734_s0] sm:$0xff] }
  0x20   :  { %v3794_v0 = vand.u32 4294901760, %v3046_v13  ;;  %3928 = vst [vmem:[#allocation37_spill] sm:$0xff] %v3061_v3  ;;  %v3797_v5 = vand.u32 4294901760, %v3053_v46  ;;  %2272 = vmatpush3.bf16.msra.mxu0 %v2973_v53  ;;  %v3077_v45 = vand.u32 4294901760, %v33_v50  ;;  %2464 = vmatpush3.bf16.msra.mxu1 %v3028_v58  ;;  %v1013_v44 = vsub.f32 %v2719_v16, %v3800_v60 }
  0x21   :  { %3927 = vst [vmem:[#allocation36_spill] sm:$0xff] %v3057_v36  ;;  %3929 = vst [vmem:[#allocation38_spill] sm:$0xff] %v3065_v9  ;;  %v3803_v48 = vand.u32 4294901760, %v3057_v36  ;;  %2274 = vmatprep.subr.bf16.mxu0 %v3015_v15  ;;  %v3931_v63 = vand.u32 4294901760, %v2695_v7  ;;  %2466 = vmatprep.subr.bf16.mxu1 %v3032_v42 }
  0x22   :  { %v191_v4 = vsub.f32 %v3046_v13, %v3794_v0  ;;  %3930 = vst [vmem:[#allocation39_spill] sm:$0xff] %v3077_v45  ;;  %v198_v29 = vsub.f32 %v3053_v46, %v3797_v5  ;;  %v3932_v5 = vand.u32 4294901760, %v3061_v3  ;;  %v3101_v60 = vsub.f32 %v33_v50, %v3077_v45 }
  0x23   :  { %v3091_v0 = vsub.f32 %v2695_v7, %v3931_v63  ;;  %v170_v11 = vsub.f32 %v3057_v36, %v3803_v48  ;;  %v28_v7 = vld [vmem:[%s3735_s1] sm:$0xff]  ;;  %v1014_v42 = vand.u32 4294901760, %v1013_v44  ;;  %v3934_v48 = vand.u32 4294901760, %v2736_v23 }
  0x24   :  { %v192_v58 = vand.u32 4294901760, %v191_v4  ;;  %v180_v40 = vsub.f32 %v3061_v3, %v3932_v5  ;;  %3933 = vst [vmem:[#allocation40_spill] sm:$0xff] %v3101_v60  ;;  %v199_v63 = vand.u32 4294901760, %v198_v29  ;;  %2276 = vmatpush3.bf16.msra.mxu0 %v3015_v15  ;;  %v3816_v3 = vand.u32 4294901760, %v3101_v60  ;;  %2468 = vmatpush3.bf16.msra.mxu1 %v3065_v9 }
  0x25   :  { %v1020_v4 = vsub.f32 %v2736_v23, %v3934_v48  ;;  %v3820_v53 = vand.u32 4294901760, %v3091_v0  ;;  %v171_v5 = vand.u32 4294901760, %v170_v11  ;;  %v3935_v45 = vand.u32 4294901760, %v2700_v8 }
  0x26   :  { %v181_v50 = vand.u32 4294901760, %v180_v40  ;;  %v2277_v28 = vpack.c.bf16 %v199_v63, %v192_v58  ;;  %v32_v44 = vmul.f32 %v28_v7, %v24_v49  ;;  %v869_v40 = vsub.f32 %v3101_v60, %v3816_v3 }
  0x27   :  { %v3118_v36 = vsub.f32 %v2700_v8, %v3935_v45  ;;  %v1021_v29 = vand.u32 4294901760, %v1020_v4  ;;  %v205_v48 = vsub.f32 %v3091_v0, %v3820_v53  ;;  %2067 = vmatprep.mubr.f32.mxu0 %v171_v5  ;;  %v3818_v15 = vand.u32 4294901760, %v2756_v30 }
  0x28   :  { %v3817_v8 = vand.u32 4294901760, %v2758_v31  ;;  %2278 = vmatprep.subr.bf16.mxu0 %v2277_v28  ;;  %2068 = vmatmul.mubr.f32.vlgmr.msra.gmra.mrb[0].mxu0 %v181_v50  ;;  %v3130_v63 = vand.u32 4294901760, %v32_v44  ;;  %v3821_v4 = vand.u32 4294901760, %v2770_v35  ;;  %v870_v49 = vand.u32 4294901760, %v869_v40 }
  0x29   :  { %v3819_v11 = vand.u32 4294901760, %v3118_v36  ;;  %v2469_v58 = vpack.c.bf16 %v1021_v29, %v1014_v42  ;;  %v206_v45 = vand.u32 4294901760, %v205_v48  ;;  %2280 = vmatpush3.bf16.msra.mxu0 %v2277_v28  ;;  %v901_v5 = vsub.f32 %v2756_v30, %v3818_v15  ;;  %2102 = vmatprep.mubr.f32.mxu0 %v3039_v22 }
  0x2a   :  { %3936 = vst [vmem:[#allocation41_spill] sm:$0xff] %v3130_v63  ;;  %v908_v50 = vsub.f32 %v2758_v31, %v3817_v8  ;;  %v3144_v42 = vsub.f32 %v32_v44, %v3130_v63  ;;  %v1027_v28 = vsub.f32 %v2770_v35, %v3821_v4  ;;  %v3826_v29 = vand.u32 4294901760, %v2783_v41  ;;  %871 = vmatprep.mubr.f32.mxu1 %v870_v49 }
  0x2b   :  { %v212_v7 = vsub.f32 %v3118_v36, %v3819_v11  ;;  %2470 = vmatprep.subr.bf16.mxu1 %v2469_v58  ;;  %v3938_v48 = vand.u32 4294901760, %v2727_v20  ;;  %v902_v8 = vand.u32 4294901760, %v901_v5  ;;  %v3939_v58 = vand.u32 4294901760, %v2732_v21 }
  0x2c   :  { %3937 = vst [vmem:[#allocation42_spill] sm:$0xff] %v3144_v42  ;;  %v909_v15 = vand.u32 4294901760, %v908_v50  ;;  %v3824_v11 = vand.u32 4294901760, %v3144_v42  ;;  %v1028_v53 = vand.u32 4294901760, %v1027_v28  ;;  %v1034_v4 = vsub.f32 %v2783_v41, %v3826_v29 }
  0x2d   :  { %v3153_v40 = vsub.f32 %v2727_v20, %v3938_v48  ;;  %v213_v3 = vand.u32 4294901760, %v212_v7  ;;  %v3158_v44 = vsub.f32 %v2732_v21, %v3939_v58  ;;  %v3830_v7 = vand.u32 4294901760, %v2797_v47 }
  0x2e   :  { %v2471_v48 = vpack.c.bf16 %v909_v15, %v902_v8  ;;  %v875_v21 = vsub.f32 %v3144_v42, %v3824_v11  ;;  %v1035_v5 = vand.u32 4294901760, %v1034_v4  ;;  %v3855_v28 = vand.u32 4294901760, %v2814_v54 }
  0x2f   :  { %v3825_v9 = vand.u32 4294901760, %v3153_v40  ;;  %v2281_v20 = vpack.c.bf16 %v213_v3, %v206_v45  ;;  %v3829_v49 = vand.u32 4294901760, %v3158_v44  ;;  %v915_v3 = vsub.f32 %v2797_v47, %v3830_v7 }
  0x30   :  { %v3833_v8 = vand.u32 4294901760, %v2816_v55  ;;  %v3834_v45 = vand.u32 4294901760, %v2827_v59  ;;  %v876_v4 = vand.u32 4294901760, %v875_v21  ;;  %v2473_v58 = vpack.c.bf16 %v1035_v5, %v1028_v53 }
  0x31   :  { %v219_v50 = vsub.f32 %v3153_v40, %v3825_v9  ;;  %2282 = vmatprep.subr.bf16.mxu0 %v2281_v20  ;;  %v226_v15 = vsub.f32 %v3158_v44, %v3829_v49  ;;  %v922_v9 = vsub.f32 %v2814_v54, %v3855_v28  ;;  %v916_v22 = vand.u32 4294901760, %v915_v3 }
  0x32   :  { %2284 = vmatpush3.bf16.msra.mxu0 %v2281_v20  ;;  %v1041_v49 = vsub.f32 %v2816_v55, %v3833_v8  ;;  %v1048_v7 = vsub.f32 %v2827_v59, %v3834_v45  ;;  %877 = vmatmul.mubr.f32.vlgmr.msra.gmra.mrb[0].mxu1 %v876_v4  ;;  %v3940_v20 = vand.u32 4294901760, %v2766_v34  ;;  %v3941_v21 = vand.u32 4294901760, %v2777_v39 }
  0x33   :  { %v220_v11 = vand.u32 4294901760, %v219_v50  ;;  %v227_v29 = vand.u32 4294901760, %v226_v15  ;;  %v923_v42 = vand.u32 4294901760, %v922_v9  ;;  %v3836_v50 = vand.u32 4294901760, %v2853_v17  ;;  %2472 = vmatpush3.bf16.msra.mxu1 %v2471_v48 }
  0x34   :  { %v3194_v53 = vsub.f32 %v2766_v34, %v3940_v20  ;;  %v3199_v5 = vsub.f32 %v2777_v39, %v3941_v21  ;;  %v1042_v3 = vand.u32 4294901760, %v1041_v49  ;;  %v1049_v8 = vand.u32 4294901760, %v1048_v7  ;;  %2474 = vmatprep.subr.bf16.mxu1 %v2473_v58 }
  0x35   :  { %v2285_v15 = vpack.c.bf16 %v227_v29, %v220_v11  ;;  %v3835_v45 = vand.u32 4294901760, %v2855_v18  ;;  %v2475_v9 = vpack.c.bf16 %v923_v42, %v916_v22  ;;  %v929_v20 = vsub.f32 %v2853_v17, %v3836_v50 }
  0x36   :  { %v3839_v4 = vand.u32 4294901760, %v3194_v53  ;;  %v3837_v34 = vand.u32 4294901760, %v3199_v5  ;;  %v2477_v39 = vpack.c.bf16 %v1049_v8, %v1042_v3  ;;  %v3838_v29 = vand.u32 4294901760, %v2873_v32 }
  0x37   :  { %2286 = vmatprep.subr.bf16.mxu0 %v2285_v15  ;;  %v936_v11 = vsub.f32 %v2855_v18, %v3835_v45  ;;  %v3840_v48 = vand.u32 4294901760, %v2875_v33  ;;  %v930_v49 = vand.u32 4294901760, %v929_v20  ;;  %v3942_v7 = vand.u32 4294901760, %v2809_v52  ;;  %2476 = vmatpush3.bf16.msra.mxu1 %v2475_v9 }
  0x38   :  { %2288 = vmatpush3.bf16.msra.mxu0 %v2285_v15  ;;  %v233_v22 = vsub.f32 %v3194_v53, %v3839_v4  ;;  %v240_v42 = vsub.f32 %v3199_v5, %v3837_v34  ;;  %v1055_v21 = vsub.f32 %v2873_v32, %v3838_v29  ;;  %v3943_v3 = vand.u32 4294901760, %v2822_v57  ;;  %2478 = vmatprep.subr.bf16.mxu1 %v2477_v39 }
  0x39   :  { %v3222_v8 = vsub.f32 %v2809_v52, %v3942_v7  ;;  %v937_v58 = vand.u32 4294901760, %v936_v11  ;;  %v1062_v15 = vsub.f32 %v2875_v33, %v3840_v48  ;;  %v3842_v9 = vand.u32 4294901760, %v2892_v51 }
  0x3a   :  { %v3233_v45 = vsub.f32 %v2822_v57, %v3943_v3  ;;  %v234_v20 = vand.u32 4294901760, %v233_v22  ;;  %v241_v50 = vand.u32 4294901760, %v240_v42  ;;  %v1056_v7 = vand.u32 4294901760, %v1055_v21 }
  0x3b   :  { %v3853_v52 = vand.u32 4294901760, %v3222_v8  ;;  %v2479_v11 = vpack.c.bf16 %v937_v58, %v930_v49  ;;  %v1063_v34 = vand.u32 4294901760, %v1062_v15  ;;  %v943_v57 = vsub.f32 %v2892_v51, %v3842_v9 }
  0x3c   :  { %v3844_v29 = vand.u32 4294901760, %v3233_v45  ;;  %v2289_v4 = vpack.c.bf16 %v241_v50, %v234_v20  ;;  %v3841_v39 = vand.u32 4294901760, %v2912_v56  ;;  %v3843_v49 = vand.u32 4294901760, %v2916_v37 }
  0x3d   :  { %v247_v48 = vsub.f32 %v3222_v8, %v3853_v52  ;;  %2480 = vmatpush3.bf16.msra.mxu1 %v2479_v11  ;;  %v2481_v22 = vpack.c.bf16 %v1063_v34, %v1056_v7  ;;  %v3845_v50 = vand.u32 4294901760, %v2924_v10  ;;  %v944_v21 = vand.u32 4294901760, %v943_v57 }
  0x3e   :  { %v254_v42 = vsub.f32 %v3233_v45, %v3844_v29  ;;  %2290 = vmatprep.subr.bf16.mxu0 %v2289_v4  ;;  %v950_v15 = vsub.f32 %v2912_v56, %v3841_v39  ;;  %v3944_v3 = vand.u32 4294901760, %v2861_v25  ;;  %v1069_v11 = vsub.f32 %v2916_v37, %v3843_v49 }
  0x3f   :  { %v248_v58 = vand.u32 4294901760, %v247_v48  ;;  %2292 = vmatpush3.bf16.msra.mxu0 %v2289_v4  ;;  %2482 = vmatprep.subr.bf16.mxu1 %v2481_v22  ;;  %v1076_v48 = vsub.f32 %v2924_v10, %v3845_v50  ;;  %v3945_v7 = vand.u32 4294901760, %v2866_v26  ;;  %v3846_v4 = vand.u32 4294901760, %v2932_v43 }
  0x40   :  { %v3256_v20 = vsub.f32 %v2861_v25, %v3944_v3  ;;  %v255_v34 = vand.u32 4294901760, %v254_v42  ;;  %v951_v39 = vand.u32 4294901760, %v950_v15  ;;  %v3848_v22 = vand.u32 4294901760, %v2947_v61 }
  0x41   :  { %v3267_v57 = vsub.f32 %v2866_v26, %v3945_v7  ;;  %v1070_v3 = vand.u32 4294901760, %v1069_v11  ;;  %v1077_v9 = vand.u32 4294901760, %v1076_v48  ;;  %v957_v26 = vsub.f32 %v2932_v43, %v3846_v4 }
  0x42   :  { %v3847_v25 = vand.u32 4294901760, %v3256_v20  ;;  %v2293_v42 = vpack.c.bf16 %v255_v34, %v248_v58  ;;  %v2483_v29 = vpack.c.bf16 %v951_v39, %v944_v21  ;;  %v964_v15 = vsub.f32 %v2947_v61, %v3848_v22 }
  0x43   :  { %v3849_v49 = vand.u32 4294901760, %v3267_v57  ;;  %v2485_v7 = vpack.c.bf16 %v1077_v9, %v1070_v3  ;;  %v3850_v39 = vand.u32 4294901760, %v2965_v2  ;;  %v3851_v21 = vand.u32 4294901760, %v2967_v38 }
  0x44   :  { %v261_v50 = vsub.f32 %v3256_v20, %v3847_v25  ;;  %2294 = vmatprep.subr.bf16.mxu0 %v2293_v42  ;;  %2484 = vmatpush3.bf16.msra.mxu1 %v2483_v29  ;;  %v958_v11 = vand.u32 4294901760, %v957_v26  ;;  %v965_v48 = vand.u32 4294901760, %v964_v15  ;;  %v3946_v4 = vand.u32 4294901760, %v2902_v19 }
  0x45   :  { %v268_v58 = vsub.f32 %v3267_v57, %v3849_v49  ;;  %2296 = vmatpush3.bf16.msra.mxu0 %v2293_v42  ;;  %2486 = vmatprep.subr.bf16.mxu1 %v2485_v7  ;;  %v1083_v3 = vsub.f32 %v2965_v2, %v3850_v39  ;;  %v1090_v22 = vsub.f32 %v2967_v38, %v3851_v21  ;;  %v3947_v29 = vand.u32 4294901760, %v2907_v6 }
  0x46   :  { %v262_v34 = vand.u32 4294901760, %v261_v50  ;;  %v3290_v25 = vsub.f32 %v2902_v19, %v3946_v4  ;;  %v2487_v42 = vpack.c.bf16 %v965_v48, %v958_v11  ;;  %v3854_v19 = vand.u32 4294901760, %v2986_v12  ;;  %v3948_v4 = vld [vmem:[#allocation25_spill] sm:$0xff]  ;;  %v3949_v48 = vld [vmem:[#allocation26_spill] sm:$0xff] }
  0x47   :  { %v269_v9 = vand.u32 4294901760, %v268_v58  ;;  %v3301_v50 = vsub.f32 %v2907_v6, %v3947_v29  ;;  %v3858_v15 = vand.u32 4294901760, %v3948_v4  ;;  %v1084_v58 = vand.u32 4294901760, %v1083_v3 }
  0x48   :  { %v3852_v26 = vand.u32 4294901760, %v3290_v25  ;;  %v1091_v49 = vand.u32 4294901760, %v1090_v22  ;;  %2488 = vmatpush3.bf16.msra.mxu1 %v2487_v42  ;;  %v971_v6 = vsub.f32 %v2986_v12, %v3854_v19  ;;  %v3864_v29 = vand.u32 4294901760, %v3949_v48  ;;  %v3951_v42 = vld [vmem:[#allocation19_spill] sm:$0xff] }
  0x49   :  { %v2297_v7 = vpack.c.bf16 %v269_v9, %v262_v34  ;;  %v3859_v39 = vand.u32 4294901760, %v3301_v50  ;;  %v978_v11 = vsub.f32 %v3948_v4, %v3858_v15  ;;  %v3950_v9 = vld [vmem:[#allocation28_spill] sm:$0xff] }
  0x4a   :  { %v275_v21 = vsub.f32 %v3290_v25, %v3852_v26  ;;  %v2489_v34 = vpack.c.bf16 %v1091_v49, %v1084_v58  ;;  %v3863_v3 = vand.u32 4294901760, %v3950_v9  ;;  %v3952_v26 = vand.u32 4294901760, %v3951_v42  ;;  %v3954_v4 = vld [vmem:[#allocation20_spill] sm:$0xff] }
  0x4b   :  { %2298 = vmatprep.subr.bf16.mxu0 %v2297_v7  ;;  %v282_v22 = vsub.f32 %v3301_v50, %v3859_v39  ;;  %v972_v28 = vand.u32 4294901760, %v971_v6  ;;  %v979_v60 = vand.u32 4294901760, %v978_v11  ;;  %v1097_v15 = vsub.f32 %v3949_v48, %v3864_v29 }
  0x4c   :  { %v3324_v52 = vsub.f32 %v3951_v42, %v3952_v26  ;;  %2300 = vmatpush3.bf16.msra.mxu0 %v2297_v7  ;;  %v276_v19 = vand.u32 4294901760, %v275_v21  ;;  %2490 = vmatprep.subr.bf16.mxu1 %v2489_v34  ;;  %v1104_v58 = vsub.f32 %v3950_v9, %v3863_v3  ;;  %v3955_v12 = vand.u32 4294901760, %v3954_v4  ;;  %v27_v21 = vld [vmem:[%s3734_s0 + $0x18] sm:$0xff] }
  0x4d   :  { %v283_v49 = vand.u32 4294901760, %v282_v22  ;;  %v31_v7 = vld [vmem:[%s3735_s1 + $0x18] sm:$0xff]  ;;  %v2491_v6 = vpack.c.bf16 %v979_v60, %v972_v28  ;;  %v1098_v11 = vand.u32 4294901760, %v1097_v15  ;;  %v3867_v42 = vand.u32 4294901760, %v3030_v14 }
  0x4e   :  { %3953 = vst [vmem:[#allocation26_spill] sm:$0xff] %v3324_v52  ;;  %v3868_v39 = vand.u32 4294901760, %v3324_v52  ;;  %v3336_v26 = vsub.f32 %v3954_v4, %v3955_v12  ;;  %v3957_v34 = vld [vmem:[#allocation30_spill] sm:$0xff]  ;;  %v1105_v29 = vand.u32 4294901760, %v1104_v58  ;;  %v35_v28 = vmul.f32 %v31_v7, %v27_v21 }
  0x4f   :  { %v3866_v22 = vand.u32 4294901760, %v3957_v34  ;;  %v2301_v3 = vpack.c.bf16 %v283_v49, %v276_v19  ;;  %2492 = vmatpush3.bf16.msra.mxu1 %v2491_v6  ;;  %v992_v60 = vsub.f32 %v3030_v14, %v3867_v42  ;;  %v3877_v15 = vand.u32 4294901760, %v3034_v62  ;;  %v26_v19 = vld [vmem:[%s3734_s0 + $0x10] sm:$0xff] }
  0x50   :  { %3956 = vst [vmem:[#allocation19_spill] sm:$0xff] %v3336_v26  ;;  %v289_v12 = vsub.f32 %v3324_v52, %v3868_v39  ;;  %v3872_v4 = vand.u32 4294901760, %v3336_v26  ;;  %v30_v49 = vld [vmem:[%s3735_s1 + $0x10] sm:$0xff]  ;;  %v2493_v58 = vpack.c.bf16 %v1105_v29, %v1098_v11  ;;  %v3882_v42 = vand.u32 4294901760, %v3037_v27 }
  0x51   :  { %v985_v9 = vsub.f32 %v3957_v34, %v3866_v22  ;;  %2302 = vmatprep.subr.bf16.mxu0 %v2301_v3  ;;  %v993_v7 = vand.u32 4294901760, %v992_v60  ;;  %v3367_v39 = vand.u32 4294901760, %v35_v28  ;;  %v1111_v14 = vsub.f32 %v3034_v62, %v3877_v15 }
  0x52   :  { %v290_v6 = vand.u32 4294901760, %v289_v12  ;;  %v296_v22 = vsub.f32 %v3336_v26, %v3872_v4  ;;  %2304 = vmatpush3.bf16.msra.mxu0 %v2301_v3  ;;  %2494 = vmatprep.subr.bf16.mxu1 %v2493_v58  ;;  %v1118_v29 = vsub.f32 %v3037_v27, %v3882_v42  ;;  %v2309_v11 = vpack.c.bf16 %v3053_v46, %v3046_v13  ;;  %v3965_v42 = vld [vmem:[#allocation39_spill] sm:$0xff] }
  0x53   :  { %v986_v21 = vand.u32 4294901760, %v985_v9  ;;  %v34_v12 = vmul.f32 %v30_v49, %v26_v19  ;;  %v3378_v9 = vsub.f32 %v35_v28, %v3367_v39  ;;  %v1112_v3 = vand.u32 4294901760, %v1111_v14 }
  0x54   :  { %v297_v34 = vand.u32 4294901760, %v296_v22  ;;  %v3881_v60 = vand.u32 4294901760, %v3067_v1  ;;  %v1119_v52 = vand.u32 4294901760, %v1118_v29  ;;  %v3880_v22 = vand.u32 4294901760, %v3069_v24 }
  0x55   :  { %v2495_v4 = vpack.c.bf16 %v993_v7, %v986_v21  ;;  %v3381_v15 = vand.u32 4294901760, %v34_v12  ;;  %v3879_v58 = vand.u32 4294901760, %v3378_v9  ;;  %v2501_v29 = vpack.c.bf16 %v2736_v23, %v2719_v16 }
  0x56   :  { %v2305_v26 = vpack.c.bf16 %v297_v34, %v290_v6  ;;  %v999_v19 = vsub.f32 %v3067_v1, %v3881_v60  ;;  %v2497_v49 = vpack.c.bf16 %v1119_v52, %v1112_v3  ;;  %v1006_v14 = vsub.f32 %v3069_v24, %v3880_v22  ;;  %v3959_v3 = vld [vmem:[#allocation35_spill] sm:$0xff] }
  0x57   :  { %2496 = vmatpush3.bf16.msra.mxu1 %v2495_v4  ;;  %v3389_v28 = vsub.f32 %v34_v12, %v3381_v15  ;;  %v884_v34 = vsub.f32 %v3378_v9, %v3879_v58  ;;  %v2313_v52 = vpack.c.bf16 %v3118_v36, %v3091_v0  ;;  %v3963_v58 = vand.u32 4294901760, %v2719_v16 }
  0x58   :  { %2306 = vmatprep.subr.bf16.mxu0 %v2305_v26  ;;  %v1000_v4 = vand.u32 4294901760, %v999_v19  ;;  %2498 = vmatprep.subr.bf16.mxu1 %v2497_v49  ;;  %v1007_v21 = vand.u32 4294901760, %v1006_v14  ;;  %v2503_v49 = vpack.c.bf16 %v2758_v31, %v2756_v30  ;;  %v2317_v14 = vpack.c.bf16 %v3158_v44, %v3153_v40 }
  0x59   :  { %3958 = vst [vmem:[#allocation20_spill] sm:$0xff] %v3389_v28  ;;  %2308 = vmatpush3.bf16.msra.mxu0 %v2305_v26  ;;  %v3878_v6 = vand.u32 4294901760, %v3389_v28  ;;  %v885_v7 = vand.u32 4294901760, %v884_v34  ;;  %v2505_v34 = vpack.c.bf16 %v2783_v41, %v2770_v35  ;;  %v3964_v22 = vand.u32 4294901760, %v2736_v23 }
  0x5a   :  { %2310 = vmatprep.subr.bf16.mxu0 %v2309_v11  ;;  %v2499_v12 = vpack.c.bf16 %v1007_v21, %v1000_v4  ;;  %v2507_v4 = vpack.c.bf16 %v2814_v54, %v2797_v47  ;;  %v2509_v21 = vpack.c.bf16 %v2827_v59, %v2816_v55  ;;  %v3970_v16 = vand.u32 4294901760, %v2770_v35 }
  0x5b   :  { %v890_v26 = vsub.f32 %v3389_v28, %v3878_v6  ;;  %886 = vmatprep.mubr.f32.mxu1 %v885_v7  ;;  %v2325_v7 = vpack.c.bf16 %v3233_v45, %v3222_v8  ;;  %v3431_v60 = vpack.c.bf16 %v3964_v22, %v3963_v58  ;;  %v3971_v23 = vand.u32 4294901760, %v2783_v41 }
  0x5c   :  { %2103 = vmatmul.mubr.f32.vlgmr.msra.gmra.mrb[0].mxu0 %v3959_v3  ;;  %2500 = vmatpush3.bf16.msra.mxu1 %v2499_v12  ;;  %v3962_v12 = vand.u32 4294901760, %v3053_v46  ;;  %v3967_v3 = vand.u32 4294901760, %v3118_v36  ;;  %v3969_v46 = vand.u32 4294901760, %v2758_v31  ;;  %v3972_v58 = vand.u32 4294901760, %v3153_v40 }
  0x5d   :  { %2312 = vmatpush3.bf16.msra.mxu0 %v2309_v11  ;;  %v891_v19 = vand.u32 4294901760, %v890_v26  ;;  %2502 = vmatprep.subr.bf16.mxu1 %v2501_v29  ;;  %v2321_v11 = vpack.c.bf16 %v3199_v5, %v3194_v53  ;;  %v3960_v26 = vld [vmem:[#allocation36_spill] sm:$0xff]  ;;  %v3961_v29 = vand.u32 4294901760, %v3046_v13  ;;  %v3968_v13 = vand.u32 4294901760, %v2756_v30 }
  0x5e   :  { %2314 = vmatprep.subr.bf16.mxu0 %v2313_v52  ;;  %2137 = vmatprep.mubr.f32.mxu0 %v3960_v26  ;;  %v3450_v22 = vpack.c.bf16 %v3971_v23, %v3970_v16  ;;  %v3975_v30 = vand.u32 4294901760, %v2814_v54  ;;  %v3977_v35 = vand.u32 4294901760, %v2827_v59  ;;  %v3979_v40 = vand.u32 4294901760, %v3199_v5 }
  0x5f   :  { %892 = vmatmul.mubr.f32.gmra.mrb[2].mxu1 %v891_v19  ;;  %v3425_v6 = vpack.c.bf16 %v3962_v12, %v3961_v29  ;;  %v3966_v19 = vand.u32 4294901760, %v3091_v0  ;;  %v3444_v29 = vpack.c.bf16 %v3969_v46, %v3968_v13  ;;  %v3973_v0 = vand.u32 4294901760, %v3158_v44 }
  0x60   :  { %1122 = vmatprep.mubr.f32.mxu1 %v3965_v42  ;;  %v3978_v12 = vand.u32 4294901760, %v3194_v53  ;;  %v3980_v44 = vand.u32 4294901760, %v2853_v17  ;;  %v3982_v54 = vand.u32 4294901760, %v2873_v32  ;;  %v3984_v59 = vand.u32 4294901760, %v3222_v8 }
  0x61   :  { %2316 = vmatpush3.bf16.msra.mxu0 %v2313_v52  ;;  %v3438_v28 = vpack.c.bf16 %v3967_v3, %v3966_v19  ;;  %v3456_v36 = vpack.c.bf16 %v3973_v0, %v3972_v58  ;;  %v3974_v52 = vand.u32 4294901760, %v2797_v47  ;;  %v3976_v3 = vand.u32 4294901760, %v2816_v55 }
  0x62   :  { %2318 = vmatprep.subr.bf16.mxu0 %v2317_v14  ;;  %v3474_v19 = vpack.c.bf16 %v3979_v40, %v3978_v12  ;;  %v3981_v47 = vand.u32 4294901760, %v2855_v18  ;;  %v3983_v55 = vand.u32 4294901760, %v2875_v33  ;;  %v3985_v53 = vand.u32 4294901760, %v3233_v45 }
  0x63   :  { %v3462_v31 = vpack.c.bf16 %v3975_v30, %v3974_v52  ;;  %v3468_v41 = vpack.c.bf16 %v3977_v35, %v3976_v3  ;;  %v3986_v5 = vand.u32 4294901760, %v2892_v51  ;;  %v3987_v23 = vand.u32 4294901760, %v2912_v56  ;;  %1124 = vmatmul.mubr.f32.vlgmr.msra.gmra.mrb[4].mxu1 %v3130_v63 }
  0x64   :  { %v3480_v13 = vpack.c.bf16 %v3981_v47, %v3980_v44  ;;  %v3486_v46 = vpack.c.bf16 %v3983_v55, %v3982_v54  ;;  %v3492_v16 = vpack.c.bf16 %v3985_v53, %v3984_v59  ;;  %v3988_v0 = vand.u32 4294901760, %v2916_v37  ;;  %2504 = vmatpush3.bf16.msra.mxu1 %v2503_v49  ;;  %v4009_v49 = vld [vmem:[#allocation26_spill] sm:$0xff]  ;;  %1129 = vmatprep.mubr.f32.mxu1 %v3367_v39 }
  0x65   :  { %v3498_v58 = vpack.c.bf16 %v3987_v23, %v3986_v5  ;;  %v3989_v52 = vand.u32 4294901760, %v2924_v10  ;;  %v3990_v8 = vand.u32 4294901760, %v3256_v20  ;;  %v3991_v45 = vand.u32 4294901760, %v3267_v57  ;;  %2320 = vmatpush3.bf16.msra.mxu0 %v2317_v14  ;;  %v4001_v5 = vld [vmem:[#allocation24_spill] sm:$0xff]  ;;  %2506 = vmatprep.subr.bf16.mxu1 %v2505_v34 }
  0x66   :  { %v3992_v35 = vand.u32 4294901760, %v2932_v43  ;;  %v3993_v12 = vand.u32 4294901760, %v2947_v61  ;;  %v3995_v44 = vand.u32 4294901760, %v2965_v2  ;;  %v3996_v47 = vand.u32 4294901760, %v2967_v38  ;;  %2322 = vmatprep.subr.bf16.mxu0 %v2321_v11 }
  0x67   :  { %v3505_v30 = vpack.c.bf16 %v3989_v52, %v3988_v0  ;;  %v3511_v3 = vpack.c.bf16 %v3991_v45, %v3990_v8  ;;  %v3998_v55 = vand.u32 4294901760, %v3290_v25  ;;  %v3999_v59 = vand.u32 4294901760, %v3301_v50  ;;  %v4003_v0 = vld [vmem:[#allocation25_spill] sm:$0xff]  ;;  %1131 = vmatmul.mubr.f32.gmra.mrb[6].mxu1 %v3381_v15 }
  0x68   :  { %v3517_v40 = vpack.c.bf16 %v3993_v12, %v3992_v35  ;;  %v3523_v54 = vpack.c.bf16 %v3996_v47, %v3995_v44  ;;  %v4002_v23 = vand.u32 4294901760, %v4001_v5  ;;  %v4004_v52 = vand.u32 4294901760, %v4003_v0  ;;  %v4007_v35 = vld [vmem:[#allocation28_spill] sm:$0xff]  ;;  %v4011_v47 = vld [vmem:[#allocation19_spill] sm:$0xff]  ;;  %2508 = vmatpush3.bf16.msra.mxu1 %v2507_v4  ;;  %v4033_v4 = vld [vmem:[#allocation9_spill] sm:$0xff] }
  0x69   :  { %v3529_v53 = vpack.c.bf16 %v3999_v59, %v3998_v55  ;;  %v4006_v45 = vand.u32 4294901760, %v3949_v48  ;;  %v4008_v12 = vand.u32 4294901760, %v4007_v35  ;;  %v4010_v14 = vand.u32 4294901760, %v4009_v49  ;;  %v4013_v59 = vld [vmem:[#allocation30_spill] sm:$0xff]  ;;  %2324 = vmatpush3.bf16.msra.mxu0 %v2321_v11  ;;  %2510 = vmatprep.subr.bf16.mxu1 %v2509_v21 }
  0x6a   :  { %3994 = vst [vmem:[#allocation36_spill] sm:$0xff] %v3517_v40  ;;  %3997 = vst [vmem:[#allocation39_spill] sm:$0xff] %v3523_v54  ;;  %v3535_v8 = vpack.c.bf16 %v4004_v52, %v4002_v23  ;;  %v4012_v63 = vand.u32 4294901760, %v4011_v47  ;;  %v4014_v54 = vand.u32 4294901760, %v4013_v59  ;;  %v4015_v40 = vld [vmem:[#allocation32_spill] sm:$0xff]  ;;  %v4017_v52 = vand.u32 4294901760, %v3034_v62  ;;  %2326 = vmatprep.subr.bf16.mxu0 %v2325_v7 }
  0x6b   :  { %4000 = vst [vmem:[#allocation43_spill] sm:$0xff] %v3529_v53  ;;  %v3541_v44 = vpack.c.bf16 %v4008_v12, %v4006_v45  ;;  %v4016_v53 = vand.u32 4294901760, %v4015_v40  ;;  %v4019_v34 = vand.u32 4294901760, %v3067_v1  ;;  %v4020_v12 = vand.u32 4294901760, %v3069_v24  ;;  %v4034_v21 = vld [vmem:[#allocation10_spill] sm:$0xff] }
  0x6c   :  { %4005 = vst [vmem:[#allocation24_spill] sm:$0xff] %v3535_v8  ;;  %v3547_v55 = vpack.c.bf16 %v4012_v63, %v4010_v14  ;;  %v4018_v8 = vand.u32 4294901760, %v3037_v27  ;;  %v4021_v14 = vld [vmem:[#allocation40_spill] sm:$0xff]  ;;  %v4035_v11 = vld [vmem:[#allocation14_spill] sm:$0xff] }
  0x6d   :  { %v3553_v23 = vpack.c.bf16 %v4016_v53, %v4014_v54  ;;  %v3566_v63 = vpack.c.bf16 %v4020_v12, %v4019_v34  ;;  %v2511_v54 = vpack.c.bf16 %v2855_v18, %v2853_v17  ;;  %v2513_v53 = vpack.c.bf16 %v2875_v33, %v2873_v32  ;;  %1266 = vmatprep.mubr.f32.mxu1 %v4021_v14  ;;  %v4045_v34 = vld [vmem:[#allocation29_spill] sm:$0xff]  ;;  %v4046_v12 = vld [vmem:[#allocation23_spill] sm:$0xff] }
  0x6e   :  { %v3559_v45 = vpack.c.bf16 %v4018_v8, %v4017_v52  ;;  %v2329_v8 = vpack.c.bf16 %v3267_v57, %v3256_v20  ;;  %v2515_v52 = vpack.c.bf16 %v2912_v56, %v2892_v51  ;;  %2328 = vmatpush3.bf16.msra.mxu0 %v2325_v7  ;;  %v2517_v17 = vpack.c.bf16 %v2924_v10, %v2916_v37  ;;  %v4024_v20 = vld [vmem:[#allocation5_spill] sm:$0xff] }
  0x6f   :  { %2512 = vmatpush3.bf16.msra.mxu1 %v2511_v54  ;;  %v2333_v18 = vpack.c.bf16 %v3301_v50, %v3290_v25  ;;  %v2519_v32 = vpack.c.bf16 %v2947_v61, %v2932_v43  ;;  %v2521_v33 = vpack.c.bf16 %v2967_v38, %v2965_v2  ;;  %v2337_v56 = vpack.c.bf16 %v4011_v47, %v4009_v49  ;;  %v4022_v43 = vld [vmem:[#allocation3_spill] sm:$0xff]  ;;  %v4023_v2 = vld [vmem:[#allocation37_spill] sm:$0xff]  ;;  %v4028_v25 = vld [vmem:[#allocation42_spill] sm:$0xff] }
  0x70   :  { %2514 = vmatprep.subr.bf16.mxu1 %v2513_v53  ;;  %2330 = vmatprep.subr.bf16.mxu0 %v2329_v8  ;;  %v2523_v10 = vpack.c.bf16 %v4003_v0, %v4001_v5  ;;  %v2525_v37 = vpack.c.bf16 %v4007_v35, %v3949_v48  ;;  %v2527_v51 = vpack.c.bf16 %v4015_v40, %v4013_v59  ;;  %v4025_v57 = vand.u32 4294901760, %v3960_v26  ;;  %v4029_v50 = vld [vmem:[#allocation6_spill] sm:$0xff]  ;;  %v4032_v48 = vld [vmem:[#allocation20_spill] sm:$0xff]  ;;  %v4038_v40 = vld [vmem:[#allocation13_spill] sm:$0xff] }
  0x71   :  { %v2529_v61 = vpack.c.bf16 %v3037_v27, %v3034_v62  ;;  %v2531_v38 = vpack.c.bf16 %v3069_v24, %v3067_v1  ;;  %v4026_v62 = vld [vmem:[#allocation4_spill] sm:$0xff]  ;;  %v4030_v1 = vld [vmem:[#allocation7_spill] sm:$0xff]  ;;  %v4036_v7 = vand.u32 4294901760, %v4021_v14  ;;  %v4039_v5 = vld [vmem:[#allocation17_spill] sm:$0xff]  ;;  %v4048_v53 = vand.u32 4294901760, %v4023_v2 }
  0x72   :  { %2332 = vmatpush3.bf16.msra.mxu0 %v2329_v8  ;;  %v4027_v27 = vld [vmem:[#allocation8_spill] sm:$0xff]  ;;  %v4031_v24 = vld [vmem:[#allocation11_spill] sm:$0xff]  ;;  %v4042_v49 = vld [vmem:[#allocation22_spill] sm:$0xff] }
  0x73   :  { %2516 = vmatpush3.bf16.msra.mxu1 %v2515_v52  ;;  %2334 = vmatprep.subr.bf16.mxu0 %v2333_v18  ;;  %v4037_v26 = vld [vmem:[#allocation12_spill] sm:$0xff]  ;;  %v4040_v0 = vld [vmem:[#allocation15_spill] sm:$0xff]  ;;  %v4043_v47 = vld [vmem:[#allocation18_spill] sm:$0xff] }
  0x74   :  { %2518 = vmatprep.subr.bf16.mxu1 %v2517_v17  ;;  %v4041_v35 = vld [vmem:[#allocation16_spill] sm:$0xff]  ;;  %v4044_v59 = vld [vmem:[#allocation21_spill] sm:$0xff]  ;;  %v4047_v54 = vld [vmem:[#allocation27_spill] sm:$0xff] }
  0x75   :  { %v4049_v8 = vld [vmem:[#allocation31_spill] sm:$0xff]  ;;  %v4050_v14 = vld [vmem:[#allocation33_spill] sm:$0xff]  ;;  %v4051_v52 = vld [vmem:[#allocation34_spill] sm:$0xff] }
  0x76   :  { %2336 = vmatpush3.bf16.msra.mxu0 %v2333_v18  ;;  %v4052_v17 = vld [vmem:[#allocation38_spill] sm:$0xff]  ;;  %v4053_v18 = vand.u32 4294901760, %v4028_v25 }
  0x77   :  { %2520 = vmatpush3.bf16.msra.mxu1 %v2519_v32  ;;  %2338 = vmatprep.subr.bf16.mxu0 %v2337_v56 }
  0x78   :  { %2522 = vmatprep.subr.bf16.mxu1 %v2521_v33 }
  0x7a   :  { %2340 = vmatpush3.bf16.msra.mxu0 %v2337_v56 }
  0x7b   :  { %2524 = vmatpush3.bf16.msra.mxu1 %v2523_v10  ;;  %2342 = vmatprep.subr.bf16.mxu0 %v4022_v43 }
  0x7c   :  { %2526 = vmatprep.subr.bf16.mxu1 %v2525_v37 }
  0x7d   :  { %2138 = vmatmul.mubr.f32.vlgmr.msra.gmra.mrb[0].mxu0 %v4023_v2 }
  0x7e   :  { %2344 = vmatpush3.bf16.msra.mxu0 %v4022_v43  ;;  %2172 = vmatprep.mubr.f32.mxu0 %v4025_v57 }
  0x7f   :  { %2528 = vmatpush3.bf16.msra.mxu1 %v2527_v51  ;;  %2346 = vmatprep.subr.bf16.mxu0 %v4024_v20 }
  0x80   :  { %2530 = vmatprep.subr.bf16.mxu1 %v2529_v61 }
  0x82   :  { %2348 = vmatpush3.bf16.msra.mxu0 %v4024_v20 }
  0x83   :  { %2532 = vmatpush3.bf16.msra.mxu1 %v2531_v38  ;;  %2350 = vmatprep.subr.bf16.mxu0 %v4027_v27 }
  0x84   :  { %2534 = vmatprep.subr.bf16.mxu1 %v4026_v62 }
  0x86   :  { %1269 = vmatmul.mubr.f32.vlgmr.msra.gmra.mrb[8].mxu1 %v4028_v25  ;;  %2352 = vmatpush3.bf16.msra.mxu0 %v4027_v27 }
  0x87   :  { %2536 = vmatpush3.bf16.msra.mxu1 %v4029_v50  ;;  %2354 = vmatprep.subr.bf16.mxu0 %v4031_v24 }
  0x88   :  { %2538 = vmatprep.subr.bf16.mxu1 %v4030_v1  ;;  %1275 = vmatprep.mubr.f32.mxu1 %v3378_v9 }
  0x8a   :  { %1278 = vmatmul.mubr.f32.gmra.mrb[10].mxu1 %v4032_v48  ;;  %2356 = vmatpush3.bf16.msra.mxu0 %v4031_v24 }
  0x8b   :  { %2540 = vmatpush3.bf16.msra.mxu1 %v4033_v4  ;;  %2358 = vmatprep.subr.bf16.mxu0 %v4035_v11 }
  0x8c   :  { %2542 = vmatprep.subr.bf16.mxu1 %v4034_v21  ;;  %1382 = vmatprep.mubr.f32.mxu1 %v4036_v7 }
  0x8e   :  { %2360 = vmatpush3.bf16.msra.mxu0 %v4035_v11 }
  0x8f   :  { %2544 = vmatpush3.bf16.msra.mxu1 %v4037_v26  ;;  %2362 = vmatprep.subr.bf16.mxu0 %v4039_v5 }
  0x90   :  { %2546 = vmatprep.subr.bf16.mxu1 %v4038_v40 }
  0x92   :  { %2364 = vmatpush3.bf16.msra.mxu0 %v4039_v5 }
  0x93   :  { %2548 = vmatpush3.bf16.msra.mxu1 %v4040_v0  ;;  %2366 = vmatprep.subr.bf16.mxu0 %v4042_v49 }
  0x94   :  { %2550 = vmatprep.subr.bf16.mxu1 %v4041_v35 }
  0x96   :  { %2368 = vmatpush3.bf16.msra.mxu0 %v4042_v49 }
  0x97   :  { %2552 = vmatpush3.bf16.msra.mxu1 %v4043_v47  ;;  %2370 = vmatprep.subr.bf16.mxu0 %v4045_v34 }
  0x98   :  { %2554 = vmatprep.subr.bf16.mxu1 %v4044_v59 }
  0x9a   :  { %2372 = vmatpush3.bf16.msra.mxu0 %v4045_v34 }
  0x9b   :  { %2556 = vmatpush3.bf16.msra.mxu1 %v4046_v12  ;;  %2374 = vmatprep.subr.bf16.mxu0 %v3425_v6 }
  0x9c   :  { %2558 = vmatprep.subr.bf16.mxu1 %v4047_v54 }
  0x9d   :  { %2173 = vmatmul.mubr.f32.vlgmr.msra.gmra.mrb[0].mxu0 %v4048_v53 }
  0x9e   :  { %2376 = vmatpush3.bf16.msra.mxu0 %v3425_v6  ;;  %2207 = vmatprep.mubr.f32.mxu0 %v4051_v52  ;;  %v4054_v6 = vand.u32 4294901760, %v3378_v9  ;;  %v4056_v9 = vld [vmem:[#allocation43_spill] sm:$0xff] }
  0x9f   :  { %2560 = vmatpush3.bf16.msra.mxu1 %v4049_v8  ;;  %2378 = vmatprep.subr.bf16.mxu0 %v3438_v28 }
  0xa0   :  { %2562 = vmatprep.subr.bf16.mxu1 %v4050_v14 }
  0xa2   :  { %2380 = vmatpush3.bf16.msra.mxu0 %v3438_v28  ;;  %v4055_v28 = vand.u32 4294901760, %v4032_v48 }
  0xa3   :  { %2564 = vmatpush3.bf16.msra.mxu1 %v4052_v17  ;;  %2382 = vmatprep.subr.bf16.mxu0 %v3456_v36 }
  0xa4   :  { %2566 = vmatprep.subr.bf16.mxu1 %v3431_v60  ;;  %v4057_v60 = vld [vmem:[#allocation36_spill] sm:$0xff] }
  0xa6   :  { %1386 = vmatmul.mubr.f32.vlgmr.msra.gmra.mrb[12].mxu1 %v4053_v18  ;;  %2384 = vmatpush3.bf16.msra.mxu0 %v3456_v36  ;;  %v4060_v36 = vld [vmem:[#allocation35_spill] sm:$0xff] }
  0xa7   :  { %2568 = vmatpush3.bf16.msra.mxu1 %v3444_v29  ;;  %2386 = vmatprep.subr.bf16.mxu0 %v3474_v19  ;;  %v4058_v29 = vld [vmem:[#allocation39_spill] sm:$0xff] }
  0xa8   :  { %2570 = vmatprep.subr.bf16.mxu1 %v3450_v22  ;;  %1393 = vmatprep.mubr.f32.mxu1 %v4054_v6  ;;  %v4059_v22 = vld [vmem:[#allocation24_spill] sm:$0xff] }
  0xaa   :  { %1397 = vmatmul.mubr.f32.gmra.mrb[14].mxu1 %v4055_v28  ;;  %2388 = vmatpush3.bf16.msra.mxu0 %v3474_v19 }
  0xab   :  { %2572 = vmatpush3.bf16.msra.mxu1 %v3462_v31  ;;  %2390 = vmatprep.subr.bf16.mxu0 %v3492_v16  ;;  %v4061_v31 = vld [vmem:[#allocation41_spill] sm:$0xff] }
  0xac   :  { %2574 = vmatprep.subr.bf16.mxu1 %v3468_v41  ;;  %1563 = vmatprep.mubr.f32.mxu1 %v3965_v42 }
  0xae   :  { %2392 = vmatpush3.bf16.msra.mxu0 %v3492_v16 }
  0xaf   :  { %2576 = vmatpush3.bf16.msra.mxu1 %v3480_v13  ;;  %2394 = vmatprep.subr.bf16.mxu0 %v3511_v3 }
  0xb0   :  { %2578 = vmatprep.subr.bf16.mxu1 %v3486_v46 }
  0xb2   :  { %2396 = vmatpush3.bf16.msra.mxu0 %v3511_v3 }
  0xb3   :  { %2580 = vmatpush3.bf16.msra.mxu1 %v3498_v58  ;;  %2398 = vmatprep.subr.bf16.mxu0 %v4056_v9 }
  0xb4   :  { %2582 = vmatprep.subr.bf16.mxu1 %v3505_v30 }
  0xb6   :  { %2400 = vmatpush3.bf16.msra.mxu0 %v4056_v9 }
  0xb7   :  { %2584 = vmatpush3.bf16.msra.mxu1 %v4057_v60  ;;  %2402 = vmatprep.subr.bf16.mxu0 %v3547_v55 }
  0xb8   :  { %2586 = vmatprep.subr.bf16.mxu1 %v4058_v29 }
  0xba   :  { %2404 = vmatpush3.bf16.msra.mxu0 %v3547_v55 }
  0xbb   :  { %2588 = vmatpush3.bf16.msra.mxu1 %v4059_v22  ;;  %2406 = vmatprep.subr.bf16.mxu0 %v4022_v43 }
  0xbc   :  { %2590 = vmatprep.subr.bf16.mxu1 %v3541_v44 }
  0xbd   :  { %2208 = vmatmul.mubr.f32.vlgmr.msra.gmra.mrb[0].mxu0 %v4060_v36 }
  0xbe   :  { %2408 = vmatpush3.bf16.msra.mxu0 %v4022_v43  ;;  %2242 = vmatprep.mubr.f32.mxu0 %v4051_v52 }
  0xbf   :  { %2592 = vmatpush3.bf16.msra.mxu1 %v3553_v23  ;;  %2410 = vmatprep.subr.bf16.mxu0 %v4024_v20 }
  0xc0   :  { %2594 = vmatprep.subr.bf16.mxu1 %v3559_v45 }
  0xc2   :  { %2412 = vmatpush3.bf16.msra.mxu0 %v4024_v20 }
  0xc3   :  { %2596 = vmatpush3.bf16.msra.mxu1 %v3566_v63  ;;  %2414 = vmatprep.subr.bf16.mxu0 %v4027_v27 }
  0xc4   :  { %2598 = vmatprep.subr.bf16.mxu1 %v4026_v62 }
  0xc6   :  { %1565 = vmatmul.mubr.f32.vlgmr.msra.gmra.mrb[16].mxu1 %v4061_v31  ;;  %2416 = vmatpush3.bf16.msra.mxu0 %v4027_v27 }
  0xc7   :  { %2600 = vmatpush3.bf16.msra.mxu1 %v4029_v50  ;;  %2418 = vmatprep.subr.bf16.mxu0 %v4031_v24 }
  0xc8   :  { %2602 = vmatprep.subr.bf16.mxu1 %v4030_v1  ;;  %1570 = vmatprep.mubr.f32.mxu1 %v3367_v39 }
  0xca   :  { %1572 = vmatmul.mubr.f32.gmra.mrb[18].mxu1 %v3381_v15  ;;  %2420 = vmatpush3.bf16.msra.mxu0 %v4031_v24 }
  0xcb   :  { %2604 = vmatpush3.bf16.msra.mxu1 %v4033_v4  ;;  %2422 = vmatprep.subr.bf16.mxu0 %v4035_v11 }
  0xcc   :  { %2606 = vmatprep.subr.bf16.mxu1 %v4034_v21  ;;  %1674 = vmatprep.mubr.f32.mxu1 %v3965_v42 }
  0xce   :  { %2424 = vmatpush3.bf16.msra.mxu0 %v4035_v11 }
  0xcf   :  { %2608 = vmatpush3.bf16.msra.mxu1 %v4037_v26  ;;  %2426 = vmatprep.subr.bf16.mxu0 %v4039_v5 }
  0xd0   :  { %2610 = vmatprep.subr.bf16.mxu1 %v4038_v40 }
  0xd2   :  { %2428 = vmatpush3.bf16.msra.mxu0 %v4039_v5 }
  0xd3   :  { %2612 = vmatpush3.bf16.msra.mxu1 %v4040_v0  ;;  %2430 = vmatprep.subr.bf16.mxu0 %v4042_v49 }
  0xd4   :  { %2614 = vmatprep.subr.bf16.mxu1 %v4041_v35 }
  0xd6   :  { %2432 = vmatpush3.bf16.msra.mxu0 %v4042_v49 }
  0xd7   :  { %2616 = vmatpush3.bf16.msra.mxu1 %v4043_v47  ;;  %2434 = vmatprep.subr.bf16.mxu0 %v4045_v34  ;;  %v1689_v47 = vstv %s3736_s5 }
  0xd8   :  { %2618 = vmatprep.subr.bf16.mxu1 %v4044_v59 }
  0xda   :  { %2436 = vmatpush3.bf16.msra.mxu0 %v4045_v34 }
  0xdb   :  { %2620 = vmatpush3.bf16.msra.mxu1 %v4046_v12 }
  0xdc   :  { %2622 = vmatprep.subr.bf16.mxu1 %v4047_v54 }
  0xdd   :  { %2243 = vmatmul.mubr.f32.vlgmr.msra.gmra.mrb[0].mxu0 %v4060_v36 }
  0xdf   :  { %2624 = vmatpush3.bf16.msra.mxu1 %v4049_v8 }
  0xe0   :  { %2626 = vmatprep.subr.bf16.mxu1 %v4050_v14 }
  0xe3   :  { %2628 = vmatpush3.bf16.msra.mxu1 %v4052_v17 }
  0xe6   :  { %1676 = vmatmul.mubr.f32.vlgmr.msra.gmra.mrb[20].mxu1 %v4061_v31 }
  0xe7   :  { %1681 = vmatprep.mubr.f32.mxu1 %v3367_v39 }
  0xea   :  { %1683 = vmatmul.mubr.f32.gmra.mrb[22].mxu1 %v3381_v15 }
 0x105   :  { %v1839_v42 = vpop.f32.mrb[0].mxu1 }
 0x106   :  { %v1840_v41 = vpop.f32.mrb[1].mxu1 }
 0x107   :  { %v1841_v19 = vadd.f32 %v1840_v41, %v1839_v42 }
 0x132   :  { %v1842_v13 = vpop.f32.mrb[2].mxu1 }
 0x133   :  { %v1843_v46 = vpop.f32.mrb[3].mxu1 }
 0x134   :  { %v1844_v16 = vadd.f32 %v1843_v46, %v1842_v13 }
 0x136   :  { %v1877_v58 = vpop.f32.mrb[4].mxu1 }
 0x137   :  { %v1878_v30 = vpop.f32.mrb[5].mxu1 }
 0x138   :  { %v1879_v3 = vadd.f32 %v1878_v30, %v1877_v58 }
 0x13a   :  { %v1880_v44 = vpop.f32.mrb[6].mxu1 }
 0x13b   :  { %v1881_v55 = vpop.f32.mrb[7].mxu1 }
 0x13c   :  { %v1882_v23 = vadd.f32 %v1881_v55, %v1880_v44 }
 0x159   :  { %v1915_v45 = vpop.f32.mrb[8].mxu1 }
 0x15a   :  { %v1916_v63 = vpop.f32.mrb[9].mxu1 }
 0x15b   :  { %v1917_v32 = vadd.f32 %v1916_v63, %v1915_v45 }
 0x15d   :  { %v1918_v33 = vpop.f32.mrb[10].mxu1 }
 0x15e   :  { %v1919_v56 = vpop.f32.mrb[11].mxu1 }
 0x15f   :  { %v1920_v39 = vadd.f32 %v1919_v56, %v1918_v33 }
 0x179   :  { %v1953_v10 = vpop.f32.mrb[12].mxu1 }
 0x17a   :  { %v1954_v15 = vpop.f32.mrb[13].mxu1 }
 0x17b   :  { %v1955_v37 = vadd.f32 %v1954_v15, %v1953_v10 }
 0x17d   :  { %v1956_v51 = vpop.f32.mrb[14].mxu1 }
 0x17e   :  { %v1957_v61 = vpop.f32.mrb[15].mxu1 }
 0x17f   :  { %v1958_v43 = vadd.f32 %v1957_v61, %v1956_v51 }
 0x199   :  { %v1991_v2 = vpop.f32.mrb[16].mxu1 }
 0x19a   :  { %v1992_v38 = vpop.f32.mrb[17].mxu1 }
 0x19b   :  { %v1993_v20 = vadd.f32 %v1992_v38, %v1991_v2 }
 0x19d   :  { %v1994_v57 = vpop.f32.mrb[18].mxu1 }
 0x19e   :  { %v1995_v62 = vpop.f32.mrb[19].mxu1 }
 0x19f   :  { %v1996_v27 = vadd.f32 %v1995_v62, %v1994_v57 }
 0x1b0   :  { %v2244_v25 = vpop.f32.mrb[0].mxu0 }
 0x1b1   :  { %v894_v50 = vadd.f32 %v2244_v25, %v1844_v16  ;;  %v760_v1 = vpop.f32.mrb[1].mxu0 }
 0x1b2   :  { %v879_v24 = vadd.f32 %v1841_v19, %v760_v1 }
 0x1b3   :  { %v1133_v48 = vadd.f32 %v1882_v23, %v894_v50 }
 0x1b4   :  { %v1126_v4 = vadd.f32 %v1879_v3, %v879_v24 }
 0x1b5   :  { %v1280_v21 = vadd.f32 %v1920_v39, %v1133_v48 }
 0x1b6   :  { %v1271_v11 = vadd.f32 %v1917_v32, %v1126_v4 }
 0x1b7   :  { %v1399_v7 = vadd.f32 %v1958_v43, %v1280_v21 }
 0x1b8   :  { %v1388_v40 = vadd.f32 %v1955_v37, %v1271_v11 }
 0x1b9   :  { %v2029_v26 = vpop.f32.mrb[20].mxu1  ;;  %v1574_v5 = vadd.f32 %v1996_v27, %v1399_v7 }
 0x1ba   :  { %v2030_v0 = vpop.f32.mrb[21].mxu1  ;;  %v1567_v35 = vadd.f32 %v1993_v20, %v1388_v40 }
 0x1bb   :  { %v2031_v49 = vadd.f32 %v2030_v0, %v2029_v26 }
 0x1bd   :  { %v1678_v59 = vadd.f32 %v2031_v49, %v1567_v35  ;;  %v2032_v34 = vpop.f32.mrb[22].mxu1 }
 0x1be   :  { %v2033_v12 = vpop.f32.mrb[23].mxu1 }
 0x1bf   :  { %v1690_v54 = vadd.f32 %v1689_v47, %v1678_v59  ;;  %v2034_v53 = vadd.f32 %v2033_v12, %v2032_v34 }
 0x1c1   :  { %1693 = vst.msk [vmem:[%s3737_s6] sm:$0xff] %vm1692_vm0, %v1690_v54  ;;  %v1685_v8 = vadd.f32 %v2034_v53, %v1574_v5 }
 0x1c3   :  { %v1691_v14 = vadd.f32 %v1689_v47, %v1685_v8 }
 0x1c5   :  { %1694 = vst.msk [vmem:[%s3737_s6 + $0x8] sm:$0xff] %vm1692_vm0, %v1691_v14 }

</bundles_post_ra>
